<compile_context>
chip_gen: v7x
topology: tpu7x:2x2x1
jax: 0.10.0
libtpu: 0.0.40
codegen_flags: <defaults>
</compile_context>

<pallas_src>
import functools

import jax
import jax.numpy as jnp
from jax.experimental import pallas as pl
from jax.experimental.pallas import tpu as pltpu


def _silu(x):
    return x * jax.nn.sigmoid(x)


def _round_up(x, m):
    return ((x + m - 1) // m) * m


def weighted_readout_kernel(x_ref, w1_ref, b1_ref, w2_ref, b2_ref, mem_ref,
                            o_ref, acc_ref, *, d_hidden):
    t = pl.program_id(1)                 # tile index along the node-reduction axis

    @pl.when(t == 0)
    def _():
        acc_ref[...] = jnp.zeros_like(acc_ref)

    x = x_ref[...]                                        # [TN, F]   (bf16)

    # First Linear with the scalar gate folded in as one extra output column:
    #   columns [:H]  -> MLP hidden pre-activation
    #   column  [H:]  -> gate pre-sigmoid
    h1_full = jnp.dot(x, w1_ref[...],
                      preferred_element_type=jnp.float32) + b1_ref[...]
    gate = jax.nn.sigmoid(h1_full[:, d_hidden:])          # [TN, 1]   f32
    h1 = _silu(h1_full[:, :d_hidden])                     # [TN, H]   f32

    h2 = jnp.dot(h1.astype(w2_ref.dtype), w2_ref[...],
                 preferred_element_type=jnp.float32) + b2_ref[...]
    h2 = _silu(h2)                                        # [TN, D]   f32

    wh = (h2 * gate).astype(mem_ref.dtype)                # [TN, D]   bf16

    # Weighted per-graph segment sum for this node tile:  [G, TN] @ [TN, D]
    acc_ref[...] += jnp.dot(mem_ref[...], wh,
                            preferred_element_type=jnp.float32)

    @pl.when(t == pl.num_programs(1) - 1)
    def _():
        o_ref[0] = acc_ref[...]


def weighted_atom_readout(node_feat, segment_ids, num_graphs, params,
                          *, tile_n=512, num_core_splits=2,
                          compute_dtype=jnp.bfloat16):
    """node_feat: [N, in_feats] f32, segment_ids: [N] int32 graph index per node."""
    w1, b1, w2, b2, ww, bw = params
    n, in_feats = node_feat.shape
    d_hidden = w1.shape[1]
    d_out = w2.shape[1]

    # Fold the gate projection into the first matmul (free extra MXU column).
    w1f = jnp.concatenate([w1, ww.reshape(in_feats, 1)], axis=1)          # [F, H+1]
    b1f = jnp.concatenate([b1.reshape(1, d_hidden), bw.reshape(1, 1)], 1)  # [1, H+1]

    # ---- node tiling ------------------------------------------------------
    tn = _round_up(min(tile_n, _round_up(n, 128)), 128)   # lane-aligned tile
    n_tiles = pl.cdiv(n, tn)
    num_splits = max(1, min(num_core_splits, n_tiles))    # v7x: 2 TCs; clamp for tiny N
    tiles_per_split = pl.cdiv(n_tiles, num_splits)
    n_pad = num_splits * tiles_per_split * tn

    x = node_feat.astype(compute_dtype)
    if n_pad != n:
        x = jnp.pad(x, ((0, n_pad - n), (0, 0)))
        seg = jnp.pad(segment_ids, (0, n_pad - n),
                      constant_values=num_graphs)          # out of range -> zero column
    else:
        seg = segment_ids

    # Dense membership built directly by comparison (no one_hot + transpose pass),
    # stored in bf16: one-hot 0/1 is exact and halves the dominant HBM stream.
    member = (seg[None, :] ==
              jnp.arange(num_graphs, dtype=seg.dtype)[:, None]).astype(compute_dtype)

    w1f = w1f.astype(compute_dtype)
    w2c = w2.astype(compute_dtype)
    b1f = b1f.astype(jnp.float32)
    b2c = b2.reshape(1, d_out).astype(jnp.float32)

    kernel = functools.partial(weighted_readout_kernel, d_hidden=d_hidden)
    tps = tiles_per_split

    cost = pl.CostEstimate(
        flops=2 * n_pad * (in_feats * (d_hidden + 1)
                           + d_hidden * d_out
                           + num_graphs * d_out),
        transcendentals=n_pad * (d_hidden + d_out + 1),
        bytes_accessed=(x.size * x.dtype.itemsize
                        + member.size * member.dtype.itemsize
                        + w1f.size * w1f.dtype.itemsize
                        + w2c.size * w2c.dtype.itemsize
                        + num_splits * num_graphs * d_out * 4),
    )

    partial_out = pl.pallas_call(
        kernel,
        out_shape=jax.ShapeDtypeStruct((num_splits, num_graphs, d_out), jnp.float32),
        grid=(num_splits, tiles_per_split),
        in_specs=[
            pl.BlockSpec((tn, in_feats),         lambda s, t: (s * tps + t, 0)),  # x tile
            pl.BlockSpec((in_feats, d_hidden + 1), lambda s, t: (0, 0)),          # W1'
            pl.BlockSpec((1, d_hidden + 1),      lambda s, t: (0, 0)),            # b1'
            pl.BlockSpec((d_hidden, d_out),      lambda s, t: (0, 0)),            # W2
            pl.BlockSpec((1, d_out),             lambda s, t: (0, 0)),            # b2
            pl.BlockSpec((num_graphs, tn),       lambda s, t: (0, s * tps + t)),  # member
        ],
        out_specs=pl.BlockSpec((1, num_graphs, d_out), lambda s, t: (s, 0, 0)),
        scratch_shapes=[pltpu.VMEM((num_graphs, d_out), jnp.float32)],
        compiler_params=pltpu.CompilerParams(
            dimension_semantics=("parallel", "arbitrary"),
            vmem_limit_bytes=32 * 1024 * 1024),
        cost_estimate=cost,
    )(x, w1f, b1f, w2c, b2c, member)

    # Combine per-core partial sums (tiny [S, G, D] add outside the kernel).
    return partial_out.sum(axis=0)


def _reference_f32(node_feat, segment_ids, num_graphs, params):
    w1, b1, w2, b2, ww, bw = params
    h = _silu(node_feat @ w1 + b1)
    h = _silu(h @ w2 + b2)
    gate = jax.nn.sigmoid(jnp.sum(node_feat * ww, axis=-1, keepdims=True) + bw)
    return jax.ops.segment_sum(h * gate, segment_ids, num_segments=num_graphs)


if __name__ == "__main__":
    key = jax.random.PRNGKey(0)
    k_x, k1, k2, k3, k4, k5, k6 = jax.random.split(key, 7)

    # Small graph batch: 2 graphs, 8 nodes each -> 16 nodes total.
    num_graphs = 2
    nodes_per_graph = 8
    n = num_graphs * nodes_per_graph
    in_feats = 32
    dims = (64, 32)          # MLP dims -> [in_feats, 64, 32]

    node_feat = jax.random.normal(k_x, (n, in_feats), dtype=jnp.float32)
    segment_ids = jnp.repeat(jnp.arange(num_graphs, dtype=jnp.int32), nodes_per_graph)

    w1 = jax.random.normal(k1, (in_feats, dims[0]), dtype=jnp.float32) * 0.1
    b1 = jax.random.normal(k2, (1, dims[0]), dtype=jnp.float32) * 0.1
    w2 = jax.random.normal(k3, (dims[0], dims[1]), dtype=jnp.float32) * 0.1
    b2 = jax.random.normal(k4, (1, dims[1]), dtype=jnp.float32) * 0.1
    ww = jax.random.normal(k5, (1, in_feats), dtype=jnp.float32) * 0.1
    bw = jax.random.normal(k6, (1, 1), dtype=jnp.float32) * 0.1
    params = (w1, b1, w2, b2, ww, bw)

    out = weighted_atom_readout(node_feat, segment_ids, num_graphs, params)
    out = jax.block_until_ready(out)

    ref = _reference_f32(node_feat, segment_ids, num_graphs, params)
    assert out.shape == (num_graphs, dims[-1])
    # bf16 MXU inputs (f32 accumulation) -> compare to the f32 reference at relaxed tol.
    assert jnp.allclose(out, ref, atol=2e-2, rtol=2e-2), \
        f"max abs err {jnp.max(jnp.abs(out - ref))}"

    print("KERNEL_OK")
</pallas_src>

<mosaic_0001>
module attributes {stable_mosaic.version = 11 : i64} {
  func.func @weighted_readout_kernel(%arg0: i32, %arg1: i32, %arg2: memref<128x32xbf16, #tpu.memory_space<vmem>>, %arg3: memref<32x65xbf16, #tpu.memory_space<vmem>>, %arg4: memref<1x65xf32, #tpu.memory_space<vmem>>, %arg5: memref<64x32xbf16, #tpu.memory_space<vmem>>, %arg6: memref<1x32xf32, #tpu.memory_space<vmem>>, %arg7: memref<2x128xbf16, #tpu.memory_space<vmem>>, %arg8: memref<1x2x32xf32, #tpu.memory_space<vmem>>, %arg9: memref<2x32xf32, #tpu.memory_space<vmem>>) attributes {dimension_semantics = [#tpu.dimension_semantics<parallel>, #tpu.dimension_semantics<arbitrary>], iteration_bounds = array<i64: 1, 1>, scalar_prefetch = 0 : i64, scratch_operands = 1 : i64, tpu.core_type = #tpu.core_type<tc>, window_params = [{transform_indices = @transform_0, window_bounds = array<i64: 128, 32>}, {pipeline_mode = #tpu.pipeline_mode<synchronous>, transform_indices = @transform_1, window_bounds = array<i64: 32, 65>}, {pipeline_mode = #tpu.pipeline_mode<synchronous>, transform_indices = @transform_2, window_bounds = array<i64: 1, 65>}, {pipeline_mode = #tpu.pipeline_mode<synchronous>, transform_indices = @transform_3, window_bounds = array<i64: 64, 32>}, {pipeline_mode = #tpu.pipeline_mode<synchronous>, transform_indices = @transform_4, window_bounds = array<i64: 1, 32>}, {transform_indices = @transform_5, window_bounds = array<i64: 2, 128>}, {transform_indices = @transform_6, window_bounds = array<i64: 1, 2, 32>}]} {
    %c0_i32 = arith.constant 0 : i32
    %0 = arith.cmpi eq, %arg1, %c0_i32 : i32
    %1 = arith.extui %0 : i1 to i32
    %c0_i32_0 = arith.constant 0 : i32
    %2 = arith.cmpi ne, %1, %c0_i32_0 : i32
    scf.if %2 {
      %cst_23 = arith.constant 0.000000e+00 : f32
      %45 = vector.broadcast %cst_23 : f32 to vector<2x32xf32>
      %c0_24 = arith.constant 0 : index
      %c0_25 = arith.constant 0 : index
      %46 = vector.load %arg9[%c0_24, %c0_25] : memref<2x32xf32, #tpu.memory_space<vmem>>, vector<2x32xf32>
      tpu.vector_store %arg9[%c0_24, %c0_25], %45 {strides = array<i32>} : memref<2x32xf32, #tpu.memory_space<vmem>>, vector<2x32xf32>,
    } else {
    }
    %c0 = arith.constant 0 : index
    %c0_1 = arith.constant 0 : index
    %3 = vector.load %arg2[%c0, %c0_1] : memref<128x32xbf16, #tpu.memory_space<vmem>>, vector<128x32xbf16>
    %c0_2 = arith.constant 0 : index
    %c0_3 = arith.constant 0 : index
    %4 = vector.load %arg3[%c0_2, %c0_3] : memref<32x65xbf16, #tpu.memory_space<vmem>>, vector<32x65xbf16>
    %cst = arith.constant dense<0.000000e+00> : vector<128x65xf32>
    %5 = tpu.matmul %3, %4, %cst {dimension_numbers = #tpu.dot_dimension_numbers<[1], [0], [0], [1], [0, 0, 1, 1], [], []>} : vector<128x32xbf16>, vector<32x65xbf16>, vector<128x65xf32> -> vector<128x65xf32>
    %c0_4 = arith.constant 0 : index
    %c0_5 = arith.constant 0 : index
    %6 = vector.load %arg4[%c0_4, %c0_5] : memref<1x65xf32, #tpu.memory_space<vmem>>, vector<1x65xf32>
    %7 = vector.broadcast %6 : vector<1x65xf32> to vector<128x65xf32>
    %8 = arith.addf %5, %7 : vector<128x65xf32>
    %9 = vector.extract_strided_slice %8 {offsets = [0, 64], sizes = [128, 1], strides = [1, 1]} : vector<128x65xf32> to vector<128x1xf32>
    %10 = arith.negf %9 : vector<128x1xf32>
    %11 = math.exp %10 : vector<128x1xf32>
    %cst_6 = arith.constant 1.000000e+00 : f32
    %12 = vector.broadcast %cst_6 : f32 to vector<128x1xf32>
    %13 = arith.addf %12, %11 : vector<128x1xf32>
    %14 = arith.divf %12, %13 : vector<128x1xf32>
    %15 = vector.extract_strided_slice %8 {offsets = [0, 0], sizes = [128, 64], strides = [1, 1]} : vector<128x65xf32> to vector<128x64xf32>
    %16 = arith.negf %15 : vector<128x64xf32>
    %17 = math.exp %16 : vector<128x64xf32>
    %cst_7 = arith.constant 1.000000e+00 : f32
    %18 = vector.broadcast %cst_7 : f32 to vector<128x64xf32>
    %19 = arith.addf %18, %17 : vector<128x64xf32>
    %20 = arith.divf %18, %19 : vector<128x64xf32>
    %21 = arith.mulf %15, %20 : vector<128x64xf32>
    %22 = arith.truncf %21 : vector<128x64xf32> to vector<128x64xbf16>
    %c0_8 = arith.constant 0 : index
    %c0_9 = arith.constant 0 : index
    %23 = vector.load %arg5[%c0_8, %c0_9] : memref<64x32xbf16, #tpu.memory_space<vmem>>, vector<64x32xbf16>
    %cst_10 = arith.constant dense<0.000000e+00> : vector<128x32xf32>
    %24 = tpu.matmul %22, %23, %cst_10 {dimension_numbers = #tpu.dot_dimension_numbers<[1], [0], [0], [1], [0, 0, 1, 1], [], []>} : vector<128x64xbf16>, vector<64x32xbf16>, vector<128x32xf32> -> vector<128x32xf32>
    %c0_11 = arith.constant 0 : index
    %c0_12 = arith.constant 0 : index
    %25 = vector.load %arg6[%c0_11, %c0_12] : memref<1x32xf32, #tpu.memory_space<vmem>>, vector<1x32xf32>
    %26 = vector.broadcast %25 : vector<1x32xf32> to vector<128x32xf32>
    %27 = arith.addf %24, %26 : vector<128x32xf32>
    %28 = arith.negf %27 : vector<128x32xf32>
    %29 = math.exp %28 : vector<128x32xf32>
    %cst_13 = arith.constant 1.000000e+00 : f32
    %30 = vector.broadcast %cst_13 : f32 to vector<128x32xf32>
    %31 = arith.addf %30, %29 : vector<128x32xf32>
    %32 = arith.divf %30, %31 : vector<128x32xf32>
    %33 = arith.mulf %27, %32 : vector<128x32xf32>
    %34 = vector.broadcast %14 : vector<128x1xf32> to vector<128x32xf32>
    %35 = arith.mulf %33, %34 : vector<128x32xf32>
    %36 = arith.truncf %35 : vector<128x32xf32> to vector<128x32xbf16>
    %c0_14 = arith.constant 0 : index
    %c0_15 = arith.constant 0 : index
    %37 = vector.load %arg9[%c0_14, %c0_15] : memref<2x32xf32, #tpu.memory_space<vmem>>, vector<2x32xf32>
    %c0_16 = arith.constant 0 : index
    %c0_17 = arith.constant 0 : index
    %38 = vector.load %arg7[%c0_16, %c0_17] : memref<2x128xbf16, #tpu.memory_space<vmem>>, vector<2x128xbf16>
    %cst_18 = arith.constant dense<0.000000e+00> : vector<2x32xf32>
    %39 = tpu.matmul %38, %36, %cst_18 {dimension_numbers = #tpu.dot_dimension_numbers<[1], [0], [0], [1], [0, 0, 1, 1], [], []>} : vector<2x128xbf16>, vector<128x32xbf16>, vector<2x32xf32> -> vector<2x32xf32>
    %40 = arith.addf %37, %39 : vector<2x32xf32>
    %c0_19 = arith.constant 0 : index
    %c0_20 = arith.constant 0 : index
    %41 = vector.load %arg9[%c0_19, %c0_20] : memref<2x32xf32, #tpu.memory_space<vmem>>, vector<2x32xf32>
    tpu.vector_store %arg9[%c0_19, %c0_20], %40 {strides = array<i32>} : memref<2x32xf32, #tpu.memory_space<vmem>>, vector<2x32xf32>,
    %c0_i32_21 = arith.constant 0 : i32
    %42 = arith.cmpi eq, %arg1, %c0_i32_21 : i32
    %43 = arith.extui %42 : i1 to i32
    %c0_i32_22 = arith.constant 0 : i32
    %44 = arith.cmpi ne, %43, %c0_i32_22 : i32
    scf.if %44 {
      %c0_23 = arith.constant 0 : index
      %c0_24 = arith.constant 0 : index
      %45 = vector.load %arg9[%c0_23, %c0_24] : memref<2x32xf32, #tpu.memory_space<vmem>>, vector<2x32xf32>
      %c0_25 = arith.constant 0 : index
      %c0_26 = arith.constant 0 : index
      %c0_27 = arith.constant 0 : index
      %46 = vector.load %arg8[%c0_25, %c0_26, %c0_27] : memref<1x2x32xf32, #tpu.memory_space<vmem>>, vector<1x2x32xf32>
      %47 = vector.shape_cast %46 : vector<1x2x32xf32> to vector<2x32xf32>
      %48 = vector.shape_cast %45 : vector<2x32xf32> to vector<1x2x32xf32>
      tpu.vector_store %arg8[%c0_25, %c0_26, %c0_27], %48 {strides = array<i32>} : memref<1x2x32xf32, #tpu.memory_space<vmem>>, vector<1x2x32xf32>,
    } else {
    }
    return
  }
  func.func @transform_0(%arg0: i32, %arg1: i32) -> (i32, i32) {
    %c1_i32 = arith.constant 1 : i32
    %0 = arith.muli %arg0, %c1_i32 : i32
    %1 = arith.addi %0, %arg1 : i32
    %c0_i32 = arith.constant 0 : i32
    %c0_i32_0 = arith.constant 0 : i32
    return %1, %c0_i32 : i32, i32
  }
  func.func @transform_1(%arg0: i32, %arg1: i32) -> (i32, i32) {
    %c0_i32 = arith.constant 0 : i32
    %c0_i32_0 = arith.constant 0 : i32
    %c0_i32_1 = arith.constant 0 : i32
    return %c0_i32, %c0_i32_0 : i32, i32
  }
  func.func @transform_2(%arg0: i32, %arg1: i32) -> (i32, i32) {
    %c0_i32 = arith.constant 0 : i32
    %c0_i32_0 = arith.constant 0 : i32
    %c0_i32_1 = arith.constant 0 : i32
    return %c0_i32, %c0_i32_0 : i32, i32
  }
  func.func @transform_3(%arg0: i32, %arg1: i32) -> (i32, i32) {
    %c0_i32 = arith.constant 0 : i32
    %c0_i32_0 = arith.constant 0 : i32
    %c0_i32_1 = arith.constant 0 : i32
    return %c0_i32, %c0_i32_0 : i32, i32
  }
  func.func @transform_4(%arg0: i32, %arg1: i32) -> (i32, i32) {
    %c0_i32 = arith.constant 0 : i32
    %c0_i32_0 = arith.constant 0 : i32
    %c0_i32_1 = arith.constant 0 : i32
    return %c0_i32, %c0_i32_0 : i32, i32
  }
  func.func @transform_5(%arg0: i32, %arg1: i32) -> (i32, i32) {
    %c1_i32 = arith.constant 1 : i32
    %0 = arith.muli %arg0, %c1_i32 : i32
    %1 = arith.addi %0, %arg1 : i32
    %c0_i32 = arith.constant 0 : i32
    %c0_i32_0 = arith.constant 0 : i32
    return %c0_i32, %1 : i32, i32
  }
  func.func @transform_6(%arg0: i32, %arg1: i32) -> (i32, i32, i32) {
    %c0_i32 = arith.constant 0 : i32
    %c0_i32_0 = arith.constant 0 : i32
    %c0_i32_1 = arith.constant 0 : i32
    return %arg0, %c0_i32, %c0_i32_0 : i32, i32, i32
  }
}

</mosaic_0001>

<bundles_post_ra>
// kernel: tpu_custom_call.1
= control target key start
LH: loop header
LB: loop body
LE: loop exit
PB: predicated region body
PF: predicated region fallthrough
CT: control target
= control target key end

     0   :  { %vm146_vm0 = vcmask 261120   ;;  %s1476_s0 = inlined_call_operand.vmem [shape: bf16[128,32], index: 0, kind: input, shape index: {}]   ;;  %s1477_s1 = inlined_call_operand.vmem [shape: bf16[32,65], index: 1, kind: input, shape index: {}]   ;;  %s1478_s2 = inlined_call_operand.vmem [shape: f32[1,65], index: 2, kind: input, shape index: {}]   ;;  %s1479_s3 = inlined_call_operand.vmem [shape: bf16[64,32], index: 3, kind: input, shape index: {}]   ;;  %s1480_s4 = inlined_call_operand.vmem [shape: f32[1,32], index: 4, kind: input, shape index: {}]   ;;  %s1481_s5 = inlined_call_operand.vmem [shape: bf16[2,128], index: 5, kind: input, shape index: {}]   ;;  %s1482_s6 = inlined_call_operand.hbm [shape: f32[1,2,32], index: 6, kind: output, shape index: {}]  }
   0x1   :  { %v1003_v0 = vld [vmem:[%s1477_s1] sm:$0xff]   ;;  %v1004_v1 = vld [vmem:[%s1477_s1 + $0x8] sm:$0xff]   ;;  %v1007_v4 = vld [vmem:[%s1476_s0 + $0x10] sm:$0xff]  }
   0x2   :  { %933 = vmatprep.subr.bf16.mxu0 %v1003_v0  ;;  %v1005_v2 = vld [vmem:[%s1476_s0] sm:$0xff]   ;;  %v1006_v3 = vld [vmem:[%s1476_s0 + $0x8] sm:$0xff]  }
   0x3   :  { %934 = vmatpush3.bf16.msra.mxu0 %v1003_v0  ;;  %937 = vmatprep.mubr.msk.bf16.mxu0 %vm146_vm0, %v1005_v2 }
   0x4   :  { %935 = vmatprep.subr.bf16.mxu0 %v1004_v1 }
   0x7   :  { %936 = vmatpush3.bf16.msra.mxu0 %v1004_v1 }
   0xa   :  { %938 = vmatmul.mubr.msk.bf16.vlgmr.msra.gmra.mrb[0].mxu0 %vm146_vm0, %v1006_v3 }
   0xb   :  { %941 = vmatprep.mubr.msk.bf16.mxu0 %vm146_vm0, %v1007_v4 }
   0xc   :  { %11 = vsyncpa [#allocation4], 0  ;;  %v1008_v5 = vld [vmem:[%s1476_s0 + $0x18] sm:$0xff]   ;;  %v1009_v6 = vld [vmem:[%s1476_s0 + $0x20] sm:$0xff]   ;;  %v1169_v13 = vmov 64   ;;  %vm427_vm1 = vcmask 523264  }
   0xd   :  { %v1010_v7 = vld [vmem:[%s1476_s0 + $0x28] sm:$0xff]   ;;  %v1011_v8 = vld [vmem:[%s1476_s0 + $0x30] sm:$0xff]   ;;  %v1012_v9 = vld [vmem:[%s1476_s0 + $0x38] sm:$0xff]   ;;  %1002 = vset.pattern.permute.xlu1 %v1169_v13  ;;  %1001 = vset.pattern.permute.xlu0 %v1169_v13  ;;  %vm1171_vm2 = vmmov 0   ;;  %vm65_vm3 = vcmask 254976   ;;  %s1172_s26 = smov [#allocation3]  }
   0xe   :  { %v1013_v10 = vld [vmem:[%s1479_s3] sm:$0xff]   ;;  %v1014_v11 = vld [vmem:[%s1479_s3 + $0x8] sm:$0xff]   ;;  %v1015_v12 = vld [vmem:[%s1479_s3 + $0x10] sm:$0xff]   ;;  %s821_s27 = sshll.u32 %s1172_s26, 4  ;;  %s822_s27 = int_to_ptr.vmem [resolvable:$true] %s821_s27 }
   0xf   :  { %953 = vmatprep.subr.bf16.mxu1 %v1013_v10  ;;  %v1016_v14 = vld [vmem:[%s1479_s3 + $0x18] sm:$0xff]   ;;  %v1261_v15 = vld [vmem:[%s1478_s2] ss:$0 sm:$0xff]  ;;  %s1145_s28 = scalar_lea.vmem %s822_s27, 32  ;;  %p1150_p1 = scmp.lt.s32.totalorder %s822_s27, %s822_s27 }
  0x10   :  { %954 = vmatpush3.bf16.msra.mxu1 %v1013_v10  ;;  %p1146_p0 = scmp.ne.s32.totalorder %s822_s27, %s1145_s28  ;;  %p1151_p2 = scmp.lt.s32.totalorder %s1145_s28, %s1145_s28 }
  0x11   :  { %955 = vmatprep.subr.bf16.mxu1 %v1014_v11 }
  0x12   :  { %942 = vmatmul.mubr.msk.bf16.gmra.mrb[4].mxu0 %vm146_vm0, %v1008_v5  ;;  %p1152_p3 = por %p1151_p2, %p1150_p1 }
  0x13   :  { %945 = vmatprep.mubr.msk.bf16.mxu0 %vm146_vm0, %v1009_v6 }
  0x14   :  { %956 = vmatpush3.bf16.msra.mxu1 %v1014_v11  ;;  %p1153_p4 = pnand %p1152_p3, %p1146_p0 }
  0x15   :  { %957 = vmatprep.subr.bf16.mxu1 %v1015_v12 }
  0x18   :  { %958 = vmatpush3.bf16.msra.mxu1 %v1015_v12 }
  0x19   :  { %959 = vmatprep.subr.bf16.mxu1 %v1016_v14 }
  0x1a   :  { %946 = vmatmul.mubr.msk.bf16.gmra.mrb[8].mxu0 %vm146_vm0, %v1010_v7 }
  0x1b   :  { %949 = vmatprep.mubr.msk.bf16.mxu0 %vm146_vm0, %v1011_v8 }
  0x1c   :  { %960 = vmatpush3.bf16.msra.mxu1 %v1016_v14 }
  0x22   :  { %950 = vmatmul.mubr.msk.bf16.gmra.mrb[12].mxu0 %vm146_vm0, %v1012_v9 }
  0xdd   :  { %v939_v16 = vpop.f32.mrb[0].mxu0 }
  0xde   :  { %v1264_v17 = vadd.f32 %v939_v16, %v1261_v15  ;;  %v205_v18 = vpop.f32.mrb[1].mxu0 }
  0xdf   :  { %v1267_v19 = vadd.f32 %v1261_v15, %v205_v18  ;;  %v940_v20 = vpop.f32.mrb[2].mxu0 }
  0xe0   :  { %v859_v21 = vmul.f32 -1.442695, %v1264_v17  ;;  %v1271_v22 = vadd.f32 %v940_v20, %v1261_v15  ;;  %v208_v23 = vpop.f32.mrb[3].mxu0 }
  0xe1   :  { %v857_v24 = vmul.f32 -1.442695, %v1267_v19  ;;  %v1275_v25 = vadd.f32 %v1261_v15, %v208_v23 }
  0xe2   :  { %1017 = vpow2.f32 %v859_v21  ;;  %v860_v26 = vmul.f32 -1.442695, %v1271_v22 }
  0xe3   :  { %1019 = vpow2.f32 %v857_v24  ;;  %v858_v27 = vmul.f32 -1.442695, %v1275_v25 }
  0xe4   :  { %1021 = vpow2.f32 %v860_v26 }
  0xe5   :  { %1023 = vpow2.f32 %v858_v27  ;;  %v943_v28 = vpop.f32.mrb[4].mxu0 }
  0xe6   :  { %v1280_v29 = vadd.f32 %v943_v28, %v1261_v15  ;;  %v221_v30 = vpop.f32.mrb[5].mxu0 }
  0xe7   :  { %v1283_v31 = vadd.f32 %v1261_v15, %v221_v30  ;;  %v944_v32 = vpop.f32.mrb[6].mxu0 }
  0xe8   :  { %v863_v33 = vmul.f32 -1.442695, %v1280_v29  ;;  %v1287_v34 = vadd.f32 %v944_v32, %v1261_v15  ;;  %v224_v35 = vpop.f32.mrb[7].mxu0 }
  0xe9   :  { %v861_v36 = vmul.f32 -1.442695, %v1283_v31  ;;  %v1291_v37 = vadd.f32 %v1261_v15, %v224_v35 }
  0xea   :  { %1025 = vpow2.f32 %v863_v33  ;;  %v864_v38 = vmul.f32 -1.442695, %v1287_v34 }
  0xeb   :  { %1027 = vpow2.f32 %v861_v36  ;;  %v862_v39 = vmul.f32 -1.442695, %v1291_v37 }
  0xec   :  { %v1018_v40 = vpop.eup %1017  ;;  %1029 = vpow2.f32 %v864_v38 }
  0xed   :  { %v1020_v41 = vpop.eup %1019  ;;  %v318_v42 = vadd.f32 1.0, %v1018_v40  ;;  %1031 = vpow2.f32 %v862_v39  ;;  %v947_v43 = vpop.f32.mrb[8].mxu0 }
  0xee   :  { %v1022_v44 = vpop.eup %1021  ;;  %v316_v45 = vadd.f32 1.0, %v1020_v41  ;;  %v1296_v46 = vadd.f32 %v947_v43, %v1261_v15  ;;  %v237_v47 = vpop.f32.mrb[9].mxu0 }
  0xef   :  { %v1024_v48 = vpop.eup %1023  ;;  %1033 = vrcp.f32 %v318_v42  ;;  %v319_v49 = vadd.f32 1.0, %v1022_v44  ;;  %v1299_v50 = vadd.f32 %v1261_v15, %v237_v47  ;;  %v948_v51 = vpop.f32.mrb[10].mxu0 }
  0xf0   :  { %1035 = vrcp.f32 %v316_v45  ;;  %v317_v52 = vadd.f32 1.0, %v1024_v48  ;;  %v867_v53 = vmul.f32 -1.442695, %v1296_v46  ;;  %v1303_v54 = vadd.f32 %v948_v51, %v1261_v15  ;;  %v240_v55 = vpop.f32.mrb[11].mxu0 }
  0xf1   :  { %1037 = vrcp.f32 %v319_v49  ;;  %v865_v56 = vmul.f32 -1.442695, %v1299_v50  ;;  %v1307_v57 = vadd.f32 %v1261_v15, %v240_v55 }
  0xf2   :  { %1039 = vrcp.f32 %v317_v52  ;;  %v868_v58 = vmul.f32 -1.442695, %v1303_v54 }
  0xf3   :  { %1041 = vpow2.f32 %v867_v53  ;;  %v866_v59 = vmul.f32 -1.442695, %v1307_v57 }
  0xf4   :  { %v1026_v60 = vpop.eup %1025  ;;  %1043 = vpow2.f32 %v865_v56 }
  0xf5   :  { %v1028_v61 = vpop.eup %1027  ;;  %v322_v62 = vadd.f32 1.0, %v1026_v60  ;;  %1045 = vpow2.f32 %v868_v58  ;;  %v951_v63 = vpop.f32.mrb[12].mxu0 }
  0xf6   :  { %v1030_v0 = vpop.eup %1029  ;;  %v320_v1 = vadd.f32 1.0, %v1028_v61  ;;  %1047 = vpow2.f32 %v866_v59  ;;  %v1312_v2 = vadd.f32 %v951_v63, %v1261_v15  ;;  %v253_v3 = vpop.f32.mrb[13].mxu0 }
  0xf7   :  { %v1032_v4 = vpop.eup %1031  ;;  %1049 = vrcp.f32 %v322_v62  ;;  %v323_v5 = vadd.f32 1.0, %v1030_v0  ;;  %v1315_v6 = vadd.f32 %v1261_v15, %v253_v3  ;;  %v952_v7 = vpop.f32.mrb[14].mxu0 }
  0xf8   :  { %1051 = vrcp.f32 %v320_v1  ;;  %v321_v8 = vadd.f32 1.0, %v1032_v4  ;;  %v871_v9 = vmul.f32 -1.442695, %v1312_v2  ;;  %v1319_v10 = vadd.f32 %v952_v7, %v1261_v15  ;;  %v256_v11 = vpop.f32.mrb[15].mxu0 }
  0xf9   :  { %v1034_v12 = vpop.eup %1033  ;;  %1053 = vrcp.f32 %v323_v5  ;;  %v869_v13 = vmul.f32 -1.442695, %v1315_v6  ;;  %v1323_v14 = vadd.f32 %v1261_v15, %v256_v11  ;;  %v1170_v11 = vmov 0.0  }
  0xfa   :  { %v1036_v16 = vpop.eup %1035  ;;  %1055 = vrcp.f32 %v321_v8  ;;  %v872_v18 = vmul.f32 -1.442695, %v1319_v10  ;;  %673 = vperm.xlu1 %1002, %v1034_v12   ;;  %v366_v24 = vmul.f32 %v1034_v12, %v1264_v17  ;;  %977 = vmatprep.subr.bf16.mxu0 %v1170_v11  ;;  %66 = vst.msk [vmem:[#allocation2] sm:$0x3] %vm65_vm3, %v1170_v11 }
  0xfb   :  { %v1038_v20 = vpop.eup %1037  ;;  %1057 = vpow2.f32 %v871_v9  ;;  %v870_v21 = vmul.f32 -1.442695, %v1323_v14  ;;  %663 = vperm.xlu0 %1001, %v1036_v16   ;;  %v364_v15 = vmul.f32 %v1036_v16, %v1267_v19  ;;  %993 = vmatprep.mubr.msk.bf16.mxu0 %vm1171_vm2, %v1170_v11 }
  0xfc   :  { %v1040_v23 = vpop.eup %1039  ;;  %v367_v26 = vmul.f32 %v1038_v20, %v1271_v22  ;;  %1059 = vpow2.f32 %v869_v13 }
  0xfd   :  { %v1042_v27 = vpop.eup %1041  ;;  %v365_v28 = vmul.f32 %v1040_v23, %v1275_v25  ;;  %1061 = vpow2.f32 %v872_v18 }
  0xfe   :  { %v1044_v30 = vpop.eup %1043  ;;  %v381_v32 = vpack.c.bf16 %v367_v26, %v366_v24  ;;  %v326_v33 = vadd.f32 1.0, %v1042_v27  ;;  %1063 = vpow2.f32 %v870_v21  ;;  %678 = vperm.xlu1 %1002, %v1038_v20  }
  0xff   :  { %v1046_v35 = vpop.eup %1045  ;;  %v324_v36 = vadd.f32 1.0, %v1044_v30  ;;  %668 = vperm.xlu0 %1001, %v1040_v23   ;;  %v380_v38 = vpack.c.bf16 %v365_v28, %v364_v15 }
 0x100   :  { %v1048_v17 = vpop.eup %1047  ;;  %1065 = vrcp.f32 %v326_v33  ;;  %v327_v22 = vadd.f32 1.0, %v1046_v35 }
 0x101   :  { %v1050_v39 = vpop.eup %1049  ;;  %1067 = vrcp.f32 %v324_v36  ;;  %v325_v40 = vadd.f32 1.0, %v1048_v17  ;;  %961 = vmatprep.mubr.msk.bf16.mxu1 %vm427_vm1, %v380_v38 }
 0x102   :  { %v1052_v19 = vpop.eup %1051  ;;  %1069 = vrcp.f32 %v327_v22  ;;  %962 = vmatmul.mubr.msk.bf16.vlgmr.msra.gmra.mrb[0].mxu1 %vm427_vm1, %v381_v32  ;;  %v370_v42 = vmul.f32 %v1050_v39, %v1280_v29 }
 0x103   :  { %v1054_v25 = vpop.eup %1053  ;;  %1071 = vrcp.f32 %v325_v40  ;;  %683 = vperm.xlu0 %1001, %v1052_v19   ;;  %v368_v45 = vmul.f32 %v1052_v19, %v1283_v31 }
 0x104   :  { %v1056_v41 = vpop.eup %1055  ;;  %v371_v43 = vmul.f32 %v1054_v25, %v1287_v34 }
 0x105   :  { %v1058_v44 = vpop.eup %1057  ;;  %v369_v47 = vmul.f32 %v1056_v41, %v1291_v37  ;;  %688 = vperm.xlu1 %1002, %v1056_v41  }
 0x106   :  { %v1060_v48 = vpop.eup %1059  ;;  %v383_v49 = vpack.c.bf16 %v371_v43, %v370_v42  ;;  %v330_v51 = vadd.f32 1.0, %v1058_v44 }
 0x107   :  { %v1062_v52 = vpop.eup %1061  ;;  %v382_v53 = vpack.c.bf16 %v369_v47, %v368_v45  ;;  %v328_v55 = vadd.f32 1.0, %v1060_v48  ;;  %693 = vperm.xlu0 %1001, %v1050_v39  }
 0x108   :  { %v1064_v56 = vpop.eup %1063  ;;  %1073 = vrcp.f32 %v330_v51  ;;  %v331_v58 = vadd.f32 1.0, %v1062_v52 }
 0x109   :  { %1075 = vrcp.f32 %v328_v55  ;;  %v329_v29 = vadd.f32 1.0, %v1064_v56  ;;  %698 = vperm.xlu1 %1002, %v1054_v25   ;;  %965 = vmatprep.mubr.msk.bf16.mxu1 %vm427_vm1, %v382_v53 }
 0x10a   :  { %v1066_v34 = vpop.eup %1065  ;;  %1077 = vrcp.f32 %v331_v58  ;;  %966 = vmatmul.mubr.msk.bf16.gmra.mrb[4].mxu1 %vm427_vm1, %v383_v49 }
 0x10b   :  { %v1068_v31 = vpop.eup %1067  ;;  %1079 = vrcp.f32 %v329_v29  ;;  %v374_v60 = vmul.f32 %v1066_v34, %v1296_v46 }
 0x10c   :  { %v1070_v37 = vpop.eup %1069  ;;  %703 = vperm.xlu0 %1001, %v1068_v31   ;;  %v372_v62 = vmul.f32 %v1068_v31, %v1299_v50 }
 0x10d   :  { %v1072_v59 = vpop.eup %1071  ;;  %v375_v61 = vmul.f32 %v1070_v37, %v1303_v54 }
 0x10e   :  { %v373_v63 = vmul.f32 %v1072_v59, %v1307_v57  ;;  %708 = vperm.xlu1 %1002, %v1072_v59  }
 0x10f   :  { %v385_v0 = vpack.c.bf16 %v375_v61, %v374_v60 }
 0x110   :  { %v384_v1 = vpack.c.bf16 %v373_v63, %v372_v62  ;;  %713 = vperm.xlu0 %1001, %v1066_v34  }
 0x112   :  { %v1074_v3 = vpop.eup %1073  ;;  %718 = vperm.xlu1 %1002, %v1070_v37   ;;  %969 = vmatprep.mubr.msk.bf16.mxu1 %vm427_vm1, %v384_v1 }
 0x113   :  { %v1076_v4 = vpop.eup %1075  ;;  %970 = vmatmul.mubr.msk.bf16.gmra.mrb[8].mxu1 %vm427_vm1, %v385_v0  ;;  %v378_v54 = vmul.f32 %v1074_v3, %v1312_v2  ;;  %v1358_v2 = vld [vmem:[%s1480_s4] ss:$0 sm:$0xff] }
 0x114   :  { %v1078_v5 = vpop.eup %1077  ;;  %723 = vperm.xlu0 %1001, %v1076_v4   ;;  %v376_v57 = vmul.f32 %v1076_v4, %v1315_v6 }
 0x115   :  { %v1080_v46 = vpop.eup %1079  ;;  %v379_v50 = vmul.f32 %v1078_v5, %v1319_v10 }
 0x116   :  { %v377_v7 = vmul.f32 %v1080_v46, %v1323_v14  ;;  %728 = vperm.xlu1 %1002, %v1080_v46  }
 0x117   :  { %v387_v8 = vpack.c.bf16 %v379_v50, %v378_v54 }
 0x118   :  { %v386_v9 = vpack.c.bf16 %v377_v7, %v376_v57  ;;  %733 = vperm.xlu0 %1001, %v1074_v3  }
 0x11a   :  { %738 = vperm.xlu1 %1002, %v1078_v5   ;;  %973 = vmatprep.mubr.msk.bf16.mxu1 %vm427_vm1, %v386_v9 }
 0x11b   :  { %974 = vmatmul.mubr.msk.bf16.gmra.mrb[12].mxu1 %vm427_vm1, %v387_v8 }
 0x179   :  { %v1394_v43 = vpop.permute.xlu1 %673 }
 0x17a   :  { %v1391_v39 = vpop.permute.xlu0 %663 }
 0x17d   :  { %v679_v61 = vpop.permute.xlu1 %678 }
 0x17e   :  { %v669_v56 = vpop.permute.xlu0 %668 }
 0x182   :  { %v1412_v46 = vpop.permute.xlu0 %683 }
 0x184   :  { %v1417_v7 = vpop.permute.xlu1 %688 }
 0x1d5   :  { %v963_v6 = vpop.f32.mrb[0].mxu1 }
 0x1d6   :  { %v1361_v10 = vadd.f32 %v963_v6, %v1358_v2  ;;  %v486_v12 = vpop.f32.mrb[1].mxu1 }
 0x1d7   :  { %v1364_v13 = vadd.f32 %v1358_v2, %v486_v12  ;;  %v964_v14 = vpop.f32.mrb[2].mxu1 }
 0x1d8   :  { %v888_v16 = vmul.f32 -1.442695, %v1361_v10  ;;  %v1368_v18 = vadd.f32 %v964_v14, %v1358_v2  ;;  %v489_v20 = vpop.f32.mrb[3].mxu1 }
 0x1d9   :  { %v886_v21 = vmul.f32 -1.442695, %v1364_v13  ;;  %v1372_v23 = vadd.f32 %v1358_v2, %v489_v20 }
 0x1da   :  { %1081 = vpow2.f32 %v888_v16  ;;  %v889_v24 = vmul.f32 -1.442695, %v1368_v18 }
 0x1db   :  { %1083 = vpow2.f32 %v886_v21  ;;  %v887_v26 = vmul.f32 -1.442695, %v1372_v23 }
 0x1dc   :  { %1085 = vpow2.f32 %v889_v24 }
 0x1dd   :  { %1087 = vpow2.f32 %v887_v26  ;;  %v967_v27 = vpop.f32.mrb[4].mxu1 }
 0x1de   :  { %v1377_v15 = vadd.f32 %v967_v27, %v1358_v2  ;;  %v502_v28 = vpop.f32.mrb[5].mxu1 }
 0x1df   :  { %v1380_v30 = vadd.f32 %v1358_v2, %v502_v28  ;;  %v968_v32 = vpop.f32.mrb[6].mxu1 }
 0x1e0   :  { %v892_v33 = vmul.f32 -1.442695, %v1377_v15  ;;  %v1384_v35 = vadd.f32 %v968_v32, %v1358_v2  ;;  %v505_v36 = vpop.f32.mrb[7].mxu1 }
 0x1e1   :  { %v890_v38 = vmul.f32 -1.442695, %v1380_v30  ;;  %v1388_v17 = vadd.f32 %v1358_v2, %v505_v36 }
 0x1e2   :  { %1089 = vpow2.f32 %v892_v33  ;;  %v893_v22 = vmul.f32 -1.442695, %v1384_v35 }
 0x1e3   :  { %1091 = vpow2.f32 %v890_v38  ;;  %v891_v40 = vmul.f32 -1.442695, %v1388_v17 }
 0x1e4   :  { %v1082_v19 = vpop.eup %1081  ;;  %1093 = vpow2.f32 %v893_v22 }
 0x1e5   :  { %v1084_v25 = vpop.eup %1083  ;;  %v599_v41 = vadd.f32 1.0, %v1082_v19  ;;  %1095 = vpow2.f32 %v891_v40 }
 0x1e6   :  { %v1086_v42 = vpop.eup %1085  ;;  %v597_v44 = vadd.f32 1.0, %v1084_v25  ;;  %v971_v45 = vpop.f32.mrb[8].mxu1 }
 0x1e7   :  { %v1088_v47 = vpop.eup %1087  ;;  %1097 = vrcp.f32 %v599_v41  ;;  %v600_v48 = vadd.f32 1.0, %v1086_v42  ;;  %v1397_v49 = vadd.f32 %v971_v45, %v1358_v2  ;;  %v518_v51 = vpop.f32.mrb[9].mxu1 }
 0x1e8   :  { %1099 = vrcp.f32 %v597_v44  ;;  %v598_v52 = vadd.f32 1.0, %v1088_v47  ;;  %v1400_v53 = vadd.f32 %v1358_v2, %v518_v51  ;;  %v972_v55 = vpop.f32.mrb[10].mxu1  ;;  %v694_v25 = vpop.permute.xlu0 %693 }
 0x1e9   :  { %1101 = vrcp.f32 %v600_v48  ;;  %v896_v58 = vmul.f32 -1.442695, %v1397_v49  ;;  %v1404_v29 = vadd.f32 %v972_v55, %v1358_v2  ;;  %v521_v34 = vpop.f32.mrb[11].mxu1 }
 0x1ea   :  { %1103 = vrcp.f32 %v598_v52  ;;  %v894_v31 = vmul.f32 -1.442695, %v1400_v53  ;;  %v1408_v37 = vadd.f32 %v1358_v2, %v521_v34 }
 0x1eb   :  { %1105 = vpow2.f32 %v896_v58  ;;  %v897_v59 = vmul.f32 -1.442695, %v1404_v29 }
 0x1ec   :  { %v1090_v60 = vpop.eup %1089  ;;  %1107 = vpow2.f32 %v894_v31  ;;  %v895_v62 = vmul.f32 -1.442695, %v1408_v37 }
 0x1ed   :  { %v1092_v63 = vpop.eup %1091  ;;  %v603_v0 = vadd.f32 1.0, %v1090_v60  ;;  %1109 = vpow2.f32 %v897_v59 }
 0x1ee   :  { %v1094_v1 = vpop.eup %1093  ;;  %v601_v3 = vadd.f32 1.0, %v1092_v63  ;;  %1111 = vpow2.f32 %v895_v62  ;;  %v975_v4 = vpop.f32.mrb[12].mxu1 }
 0x1ef   :  { %v1096_v5 = vpop.eup %1095  ;;  %1113 = vrcp.f32 %v603_v0  ;;  %v604_v54 = vadd.f32 1.0, %v1094_v1  ;;  %v1415_v50 = vadd.f32 %v975_v4, %v1358_v2  ;;  %v534_v57 = vpop.f32.mrb[13].mxu1 }
 0x1f0   :  { %1115 = vrcp.f32 %v601_v3  ;;  %v602_v8 = vadd.f32 1.0, %v1096_v5  ;;  %v1420_v9 = vadd.f32 %v1358_v2, %v534_v57  ;;  %v976_v6 = vpop.f32.mrb[14].mxu1 }
 0x1f1   :  { %v1098_v12 = vpop.eup %1097  ;;  %1117 = vrcp.f32 %v604_v54  ;;  %v900_v14 = vmul.f32 -1.442695, %v1415_v50  ;;  %v1424_v16 = vadd.f32 %v976_v6, %v1358_v2  ;;  %v537_v20 = vpop.f32.mrb[15].mxu1 }
 0x1f2   :  { %v1100_v21 = vpop.eup %1099  ;;  %v647_v24 = vmul.f32 %v1098_v12, %v1361_v10  ;;  %1119 = vrcp.f32 %v602_v8  ;;  %v898_v26 = vmul.f32 -1.442695, %v1420_v9  ;;  %v1429_v27 = vadd.f32 %v1358_v2, %v537_v20  ;;  %v699_v2 = vpop.permute.xlu1 %698 }
 0x1f3   :  { %v1102_v28 = vpop.eup %1101  ;;  %v645_v32 = vmul.f32 %v1100_v21, %v1364_v13  ;;  %1121 = vpow2.f32 %v900_v14  ;;  %v901_v33 = vmul.f32 -1.442695, %v1424_v16 }
 0x1f4   :  { %v1104_v36 = vpop.eup %1103  ;;  %v648_v38 = vmul.f32 %v1102_v28, %v1368_v18  ;;  %1123 = vpow2.f32 %v898_v26  ;;  %v899_v22 = vmul.f32 -1.442695, %v1429_v27  ;;  %v743_v41 = vmul.f32 %v1394_v43, %v647_v24 }
 0x1f5   :  { %v1106_v40 = vpop.eup %1105  ;;  %v646_v10 = vmul.f32 %v1104_v36, %v1372_v23  ;;  %1125 = vpow2.f32 %v901_v33  ;;  %v741_v45 = vmul.f32 %v1391_v39, %v645_v32 }
 0x1f6   :  { %v1108_v19 = vpop.eup %1107  ;;  %v744_v42 = vmul.f32 %v679_v61, %v648_v38  ;;  %v607_v13 = vadd.f32 1.0, %v1106_v40  ;;  %1127 = vpow2.f32 %v899_v22  ;;  %v709_v60 = vpop.permute.xlu1 %708 }
 0x1f7   :  { %v1110_v44 = vpop.eup %1109  ;;  %v742_v47 = vmul.f32 %v669_v56, %v646_v10  ;;  %v605_v18 = vadd.f32 1.0, %v1108_v19  ;;  %v704_v56 = vpop.permute.xlu0 %703 }
 0x1f8   :  { %v1112_v48 = vpop.eup %1111  ;;  %v758_v51 = vpack.c.bf16 %v744_v42, %v743_v41  ;;  %1129 = vrcp.f32 %v607_v13  ;;  %v608_v52 = vadd.f32 1.0, %v1110_v44 }
 0x1f9   :  { %v1114_v55 = vpop.eup %1113  ;;  %v757_v23 = vpack.c.bf16 %v742_v47, %v741_v45  ;;  %1131 = vrcp.f32 %v605_v18  ;;  %v606_v58 = vadd.f32 1.0, %v1112_v48 }
 0x1fa   :  { %v1116_v34 = vpop.eup %1115  ;;  %v651_v31 = vmul.f32 %v1114_v55, %v1377_v15  ;;  %1133 = vrcp.f32 %v608_v52  ;;  %v719_v20 = vpop.permute.xlu1 %718 }
 0x1fb   :  { %v1118_v43 = vpop.eup %1117  ;;  %v649_v59 = vmul.f32 %v1116_v34, %v1380_v30  ;;  %1135 = vrcp.f32 %v606_v58  ;;  %978 = vmatpush3.bf16.msra.mxu0 %v757_v23  ;;  %v714_v14 = vpop.permute.xlu0 %713 }
 0x1fc   :  { %v1120_v39 = vpop.eup %1119  ;;  %v652_v61 = vmul.f32 %v1118_v43, %v1384_v35  ;;  %979 = vmatprep.subr.bf16.mxu0 %v1170_v11  ;;  %v747_v1 = vmul.f32 %v694_v25, %v651_v31 }
 0x1fd   :  { %v1122_v62 = vpop.eup %1121  ;;  %v650_v63 = vmul.f32 %v1120_v39, %v1388_v17  ;;  %v745_v5 = vmul.f32 %v1412_v46, %v649_v59 }
 0x1fe   :  { %v1124_v0 = vpop.eup %1123  ;;  %v748_v3 = vmul.f32 %v699_v2, %v652_v61  ;;  %v611_v15 = vadd.f32 1.0, %v1122_v62  ;;  %v729_v22 = vpop.permute.xlu1 %728 }
 0x1ff   :  { %v1126_v4 = vpop.eup %1125  ;;  %v746_v30 = vmul.f32 %v1417_v7, %v650_v63  ;;  %v609_v54 = vadd.f32 1.0, %v1124_v0  ;;  %980 = vmatpush3.bf16.msra.mxu0 %v758_v51  ;;  %v724_v38 = vpop.permute.xlu0 %723 }
 0x200   :  { %v1128_v57 = vpop.eup %1127  ;;  %v760_v8 = vpack.c.bf16 %v748_v3, %v747_v1  ;;  %1137 = vrcp.f32 %v611_v15  ;;  %v612_v35 = vadd.f32 1.0, %v1126_v4  ;;  %981 = vmatprep.subr.bf16.mxu0 %v1170_v11 }
 0x201   :  { %v759_v6 = vpack.c.bf16 %v746_v30, %v745_v5  ;;  %1139 = vrcp.f32 %v609_v54  ;;  %v610_v17 = vadd.f32 1.0, %v1128_v57 }
 0x202   :  { %v1130_v12 = vpop.eup %1129  ;;  %1141 = vrcp.f32 %v612_v35  ;;  %v739_v44 = vpop.permute.xlu1 %738 }
 0x203   :  { %v1132_v21 = vpop.eup %1131  ;;  %v655_v46 = vmul.f32 %v1130_v12, %v1397_v49  ;;  %1143 = vrcp.f32 %v610_v17  ;;  %982 = vmatpush3.bf16.msra.mxu0 %v759_v6  ;;  %v734_v13 = vpop.permute.xlu0 %733 }
 0x204   :  { %v1134_v7 = vpop.eup %1133  ;;  %v653_v24 = vmul.f32 %v1132_v21, %v1400_v53  ;;  %983 = vmatprep.subr.bf16.mxu0 %v1170_v11 }
 0x205   :  { %v1136_v26 = vpop.eup %1135  ;;  %v656_v28 = vmul.f32 %v1134_v7, %v1404_v29  ;;  %v751_v33 = vmul.f32 %v714_v14, %v655_v46 }
 0x206   :  { %v654_v32 = vmul.f32 %v1136_v26, %v1408_v37  ;;  %v749_v40 = vmul.f32 %v704_v56, %v653_v24 }
 0x207   :  { %v752_v36 = vmul.f32 %v719_v20, %v656_v28  ;;  %984 = vmatpush3.bf16.msra.mxu0 %v760_v8 }
 0x208   :  { %v750_v10 = vmul.f32 %v709_v60, %v654_v32  ;;  %985 = vmatprep.subr.bf16.mxu0 %v1170_v11 }
 0x209   :  { %v762_v49 = vpack.c.bf16 %v752_v36, %v751_v33 }
 0x20a   :  { %v1138_v19 = vpop.eup %1137  ;;  %v761_v25 = vpack.c.bf16 %v750_v10, %v749_v40 }
 0x20b   :  { %v1140_v53 = vpop.eup %1139  ;;  %v659_v2 = vmul.f32 %v1138_v19, %v1415_v50 }
 0x20c   :  { %v1142_v41 = vpop.eup %1141  ;;  %v657_v29 = vmul.f32 %v1140_v53, %v1420_v9  ;;  %986 = vmatpush3.bf16.msra.mxu0 %v761_v25  ;;  %v766_v9 = vld [vmem:[%s1481_s5] sm:$0x1] }
 0x20d   :  { %v1144_v37 = vpop.eup %1143  ;;  %v660_v42 = vmul.f32 %v1142_v41, %v1424_v16  ;;  %987 = vmatprep.subr.bf16.mxu0 %v1170_v11  ;;  %v755_v47 = vmul.f32 %v734_v13, %v659_v2  ;;  %v765_v16 = vld [vmem:[#allocation2] sm:$0x3] }
 0x20e   :  { %v658_v45 = vmul.f32 %v1144_v37, %v1429_v27  ;;  %v753_v48 = vmul.f32 %v724_v38, %v657_v29 }
 0x20f   :  { %v756_v18 = vmul.f32 %v739_v44, %v660_v42 }
 0x210   :  { %v754_v51 = vmul.f32 %v729_v22, %v658_v45  ;;  %988 = vmatpush3.bf16.msra.mxu0 %v762_v49 }
 0x211   :  { %v764_v52 = vpack.c.bf16 %v756_v18, %v755_v47  ;;  %989 = vmatprep.subr.bf16.mxu0 %v1170_v11 }
 0x212   :  { %v763_v50 = vpack.c.bf16 %v754_v51, %v753_v48 }
 0x214   :  { %990 = vmatpush3.bf16.msra.mxu0 %v763_v50 }
 0x215   :  { %991 = vmatprep.subr.bf16.mxu0 %v1170_v11 }
 0x218   :  { %992 = vmatpush3.bf16.msra.mxu0 %v764_v52 }
 0x21b   :  { %994 = vmatmul.mubr.bf16.vlgmr.msra.gmra.mrb[16].mxu0 %v766_v9 }
 0x2ee   :  { %v801_v27 = vpop.f32.mrb[16].mxu0 }
 0x2ef   :  { %v807_v55 = vadd.f32 %v801_v27, %v765_v16  ;;  %v995_v23 = vpop.f32.mrb[17].mxu0 }
 0x2f0   :  { %v804_v58 = vpop.f32.mrb[18].mxu0 }
 0x2f1   :  { %809 = vst.msk [vmem:[#allocation2] sm:$0x3] %vm65_vm3, %v807_v55  ;;  %v996_v34 = vpop.f32.mrb[19].mxu0 }
 0x2f8   :  { %v813_v31 = vld [vmem:[#allocation2] sm:$0x3] }
 0x2f9   :  { %814 = vst.msk [vmem:[#allocation3] sm:$0x3] %vm65_vm3, %v813_v31 }
 0x2fa   :  { %1156 = shalt.err (!%p1153_p4)
}
 0x2fb   :  { %s1157_s30 = scalar_lea.hbm %s1482_s6, 32 }
 0x2fc   :  { %p1158_p5 = scmp.ne.s32.totalorder %s1482_s6, %s1157_s30  ;;  %p1161_p6 = scmp.lt.u32.totalorder %s1157_s30, %s1482_s6 }
 0x2fe   :  { %p1163_p7 = pnand %p1161_p6, %p1158_p5 }
 0x300   :  { %1166 = shalt.err (!%p1163_p7)
}
 0x301   :  { %824 = dma.vmem_to_hbm [thread:$0]  %s822_s27, 32, %s1482_s6, [#allocation4]  }
 0x302   :  { %1167 = dma.done.wait [#allocation4], 32  }
 0x303   :  { %1168 = vsyncadd [#allocation4], 4294967264 }
 0x304   :  { %828 = vsyncpa [#allocation4], 1 }

</bundles_post_ra>
